<compile_context>
chip_gen: v7x
topology: tpu7x:2x2x1
jax: 0.10.0
libtpu: 0.0.40
codegen_flags: <defaults>
</compile_context>

<pallas_src>
import jax
import jax.numpy as jnp
from jax.experimental import pallas as pl
from jax.experimental.pallas import tpu as pltpu


_VMEM_LIMIT_BYTES = 48 * 1024 * 1024   # within physical VMEM on v5e/v6e/v7x


# ---------------------------------------------------------------------------
# Kernels
# ---------------------------------------------------------------------------
def _score_kernel(z_ref, w1_ref, b1_ref, w2_ref, s_ref):
    """Per-row attention logit: s = sum_h tanh(z @ W1 + b1) * w2."""
    h = jnp.tanh(
        jnp.dot(z_ref[...], w1_ref[...], preferred_element_type=jnp.float32)
        + b1_ref[...])                                   # (TR, H) f32, EUP tanh
    # Second linear (H -> 1, no bias) as VPU multiply + lane reduce (avoids a
    # 1-wide MXU matmul).
    s_ref[...] = jnp.sum(h * w2_ref[...], axis=1, keepdims=True)


def _weighted_sum_mm_kernel(z_ref, r_ref, out_ref):
    """out = z_rows(N, M*D) @ R_beta(M*D, D); R_beta folds beta + group sum."""
    out_ref[...] = jnp.dot(
        z_ref[...], r_ref[...], preferred_element_type=jnp.float32
    ).astype(out_ref.dtype)


def _weighted_sum_loop_kernel(beta_ref, z_ref, out_ref):
    """General path: unrolled accumulation over the (small, static) M axis."""
    m = z_ref.shape[1]
    acc = z_ref[:, 0, :] * beta_ref[0]                   # beta from SMEM scalars
    for j in range(1, m):                                # unrolled at trace time
        acc = acc + z_ref[:, j, :] * beta_ref[j]
    out_ref[...] = acc.astype(out_ref.dtype)


# ---------------------------------------------------------------------------
# Tile sizing with (8, 128) padded-byte accounting
# ---------------------------------------------------------------------------
def _round_up(x, k):
    return (x + k - 1) // k * k


def _padded_tile_bytes(rows, cols, itemsize=4):
    """VMEM footprint of a 2-D f32 tile after sublane/lane padding."""
    return _round_up(max(rows, 1), 8) * _round_up(max(cols, 1), 128) * itemsize


def _pick_pass1_rows(budget, d, h, total_rows):
    # Per row (padded): double-buffered z rows + (TR, H) tanh intermediate and
    # its w2 product + double-buffered (TR, 1) output (lane-padded to 128).
    per_row = (2 * _round_up(d, 128) + 2 * _round_up(h, 128) + 2 * 128) * 4
    fixed = 2 * _padded_tile_bytes(d, h) + 4 * _padded_tile_bytes(1, h)
    avail = max(budget - fixed, 8 * per_row)
    tr = (avail // per_row) // 8 * 8
    return max(8, min(tr, _round_up(total_rows, 8)))


def _pick_pass2_mm_nodes(budget, m, d, n_total):
    per_node = (2 * _round_up(m * d, 128) + 2 * _round_up(d, 128)) * 4
    fixed = 2 * _padded_tile_bytes(m * d, d)
    avail = max(budget - fixed, 8 * per_node)
    tn = (avail // per_node) // 8 * 8
    return max(8, min(tn, _round_up(n_total, 8)))


def _pick_pass2_loop_nodes(budget, m, d, n_total):
    per_node = (2 * _round_up(m, 8) * _round_up(d, 128)
                + 3 * _round_up(d, 128)) * 4
    avail = max(budget, 8 * per_node)
    tn = (avail // per_node) // 8 * 8
    return max(8, min(tn, _round_up(n_total, 8)))


# ---------------------------------------------------------------------------
# Wrapper
# ---------------------------------------------------------------------------
def semantic_attention(z, w1, b1, w2, *,
                       vmem_budget_bytes=32 * 1024 * 1024,
                       weighted_sum_impl="auto"):
    """z: (N, M, D); w1: (D, H); b1: (H,); w2: (H, 1) -> (N, D)."""
    n, m, d = z.shape
    h = w1.shape[1]
    nr = n * m

    z = z.astype(jnp.float32)
    w1 = w1.astype(jnp.float32)
    b1_row = b1.reshape(1, h).astype(jnp.float32)
    w2_row = w2.reshape(1, h).astype(jnp.float32)   # (H,1) column -> (1,H) row

    # ---------------- pass 1: per-row logits (parallel grid) ----------------
    tr = _pick_pass1_rows(vmem_budget_bytes, d, h, nr)
    nr_pad = _round_up(nr, tr)
    z_flat = z.reshape(nr, d)
    if nr_pad > nr:
        z_flat = jnp.pad(z_flat, ((0, nr_pad - nr), (0, 0)))

    cost1 = pl.CostEstimate(
        flops=2 * nr * d * h + 3 * nr * h,
        transcendentals=nr * h,
        bytes_accessed=nr * d * 4 + d * h * 4 + 2 * h * 4 + nr * 4)

    scores = pl.pallas_call(
        _score_kernel,
        out_shape=jax.ShapeDtypeStruct((nr_pad, 1), jnp.float32),
        grid=(nr_pad // tr,),
        in_specs=[
            pl.BlockSpec((tr, d), lambda i: (i, 0)),   # z rows, streamed once
            pl.BlockSpec((d, h), lambda i: (0, 0)),    # w1 (resident)
            pl.BlockSpec((1, h), lambda i: (0, 0)),    # b1 row
            pl.BlockSpec((1, h), lambda i: (0, 0)),    # w2 row
        ],
        out_specs=pl.BlockSpec((tr, 1), lambda i: (i, 0)),
        compiler_params=pltpu.CompilerParams(
            dimension_semantics=("parallel",),
            vmem_limit_bytes=_VMEM_LIMIT_BYTES),
        cost_estimate=cost1,
    )(z_flat, w1, b1_row, w2_row)

    # Tiny (M,) finalize in plain JAX: mean over nodes, softmax over metapaths.
    wm = jnp.mean(scores[:nr, 0].reshape(n, m), axis=0)
    beta = jax.nn.softmax(wm)                            # (M,) f32

    # ---------------- pass 2: beta-weighted sum over metapaths --------------
    r_beta_bytes = _padded_tile_bytes(m * d, d)
    if weighted_sum_impl == "auto":
        use_mm = (r_beta_bytes <= 2 * 1024 * 1024) and (d <= 512)
    else:
        use_mm = weighted_sum_impl == "matmul"

    if use_mm:
        # Lane-dense rows (N, M*D); beta + group-reduce folded into R_beta.
        tn = _pick_pass2_mm_nodes(vmem_budget_bytes, m, d, n)
        n_pad = _round_up(n, tn)
        z2 = z.reshape(n, m * d)
        if n_pad > n:
            z2 = jnp.pad(z2, ((0, n_pad - n), (0, 0)))
        # R_beta[m*D + i, j] = beta[m] * (i == j)
        r_beta = (beta[:, None, None] *
                  jnp.eye(d, dtype=jnp.float32)[None, :, :]).reshape(m * d, d)

        cost2 = pl.CostEstimate(
            flops=2 * n * (m * d) * d,
            transcendentals=0,
            bytes_accessed=n * m * d * 4 + n * d * 4 + m * d * d * 4)

        out = pl.pallas_call(
            _weighted_sum_mm_kernel,
            out_shape=jax.ShapeDtypeStruct((n_pad, d), jnp.float32),
            grid=(n_pad // tn,),
            in_specs=[
                pl.BlockSpec((tn, m * d), lambda i: (i, 0)),   # z rows
                pl.BlockSpec((m * d, d), lambda i: (0, 0)),    # R_beta resident
            ],
            out_specs=pl.BlockSpec((tn, d), lambda i: (i, 0)),
            compiler_params=pltpu.CompilerParams(
                dimension_semantics=("parallel",),
                vmem_limit_bytes=_VMEM_LIMIT_BYTES),
            cost_estimate=cost2,
        )(z2, r_beta)
    else:
        # General path: (TN, M, D) blocks, unrolled accumulation over M with
        # SMEM beta scalars (no materialized (TN, M, D) weighted temp).
        tn = _pick_pass2_loop_nodes(vmem_budget_bytes, m, d, n)
        n_pad = _round_up(n, tn)
        zp = z if n_pad == n else jnp.pad(z, ((0, n_pad - n), (0, 0), (0, 0)))

        cost2 = pl.CostEstimate(
            flops=2 * n * m * d,
            transcendentals=0,
            bytes_accessed=n * m * d * 4 + n * d * 4)

        out = pl.pallas_call(
            _weighted_sum_loop_kernel,
            out_shape=jax.ShapeDtypeStruct((n_pad, d), jnp.float32),
            grid=(n_pad // tn,),
            in_specs=[
                pl.BlockSpec(memory_space=pltpu.MemorySpace.SMEM),  # beta (M,)
                pl.BlockSpec((tn, m, d), lambda i: (i, 0, 0)),      # z tile
            ],
            out_specs=pl.BlockSpec((tn, d), lambda i: (i, 0)),
            compiler_params=pltpu.CompilerParams(
                dimension_semantics=("parallel",),
                vmem_limit_bytes=_VMEM_LIMIT_BYTES),
            cost_estimate=cost2,
        )(beta, zp)

    return out[:n]


# ---------------------------------------------------------------------------
# Reference + inputs
# ---------------------------------------------------------------------------
def semantic_attention_ref(z, w1, b1, w2):
    w = jnp.tanh(z @ w1 + b1[None, None, :]) @ w2        # (N, M, 1)
    wm = jnp.mean(w, axis=0)                             # (M, 1)
    beta = jax.nn.softmax(wm, axis=0)                    # (M, 1)
    return jnp.sum(beta[None, :, :] * z, axis=1)         # (N, D)


def _make_inputs(key, n, m, d, h):
    kz, kw1, kb1, kw2 = jax.random.split(key, 4)
    z = jax.random.normal(kz, (n, m, d), dtype=jnp.float32)
    bound1 = 1.0 / (d ** 0.5)
    w1 = jax.random.uniform(kw1, (d, h), jnp.float32, -bound1, bound1)
    b1 = jax.random.uniform(kb1, (h,), jnp.float32, -bound1, bound1)
    bound2 = 1.0 / (h ** 0.5)
    w2 = jax.random.uniform(kw2, (h, 1), jnp.float32, -bound2, bound2)
    return z, w1, b1, w2


if __name__ == "__main__":
    key = jax.random.PRNGKey(0)
    k1, k2 = jax.random.split(key)

    # Test 1: module-default hidden size; small-D lane-dense matmul path.
    N, M, D, H = 16, 4, 32, 128
    z, w1, b1, w2 = _make_inputs(k1, N, M, D, H)
    out = jax.block_until_ready(semantic_attention(z, w1, b1, w2))
    ref = semantic_attention_ref(z, w1, b1, w2)
    assert out.shape == (N, D), out.shape
    assert jnp.allclose(out, ref, atol=1e-4, rtol=1e-4), float(
        jnp.max(jnp.abs(out - ref)))

    # Test 2: non-divisible N, tiny VMEM budget (multi-tile grid + row/node
    # zero-padding) and the general (TN, M, D) accumulation path for pass 2.
    N2, M2, D2, H2 = 13, 3, 64, 32
    z2, w12, b12, w22 = _make_inputs(k2, N2, M2, D2, H2)
    out2 = jax.block_until_ready(
        semantic_attention(z2, w12, b12, w22,
                           vmem_budget_bytes=64 * 1024,
                           weighted_sum_impl="loop"))
    ref2 = semantic_attention_ref(z2, w12, b12, w22)
    assert out2.shape == (N2, D2), out2.shape
    assert jnp.allclose(out2, ref2, atol=1e-4, rtol=1e-4), float(
        jnp.max(jnp.abs(out2 - ref2)))

    print("KERNEL_OK")
</pallas_src>

<mosaic_0001>
module attributes {stable_mosaic.version = 11 : i64} {
  func.func @_score_kernel(%arg0: i32, %arg1: memref<64x32xf32, #tpu.memory_space<vmem>>, %arg2: memref<32x128xf32, #tpu.memory_space<vmem>>, %arg3: memref<1x128xf32, #tpu.memory_space<vmem>>, %arg4: memref<1x128xf32, #tpu.memory_space<vmem>>, %arg5: memref<64x1xf32, #tpu.memory_space<vmem>>) attributes {dimension_semantics = [#tpu.dimension_semantics<parallel>], iteration_bounds = array<i64: 1>, scalar_prefetch = 0 : i64, scratch_operands = 0 : i64, tpu.core_type = #tpu.core_type<tc>, window_params = [{transform_indices = @transform_0, window_bounds = array<i64: 64, 32>}, {pipeline_mode = #tpu.pipeline_mode<synchronous>, transform_indices = @transform_1, window_bounds = array<i64: 32, 128>}, {pipeline_mode = #tpu.pipeline_mode<synchronous>, transform_indices = @transform_2, window_bounds = array<i64: 1, 128>}, {pipeline_mode = #tpu.pipeline_mode<synchronous>, transform_indices = @transform_3, window_bounds = array<i64: 1, 128>}, {transform_indices = @transform_4, window_bounds = array<i64: 64, 1>}]} {
    %c0 = arith.constant 0 : index
    %c0_0 = arith.constant 0 : index
    %0 = vector.load %arg1[%c0, %c0_0] : memref<64x32xf32, #tpu.memory_space<vmem>>, vector<64x32xf32>
    %c0_1 = arith.constant 0 : index
    %c0_2 = arith.constant 0 : index
    %1 = vector.load %arg2[%c0_1, %c0_2] : memref<32x128xf32, #tpu.memory_space<vmem>>, vector<32x128xf32>
    %cst = arith.constant dense<0.000000e+00> : vector<64x128xf32>
    %2 = tpu.matmul %0, %1, %cst {dimension_numbers = #tpu.dot_dimension_numbers<[1], [0], [0], [1], [0, 0, 1, 1], [], []>} : vector<64x32xf32>, vector<32x128xf32>, vector<64x128xf32> -> vector<64x128xf32>
    %c0_3 = arith.constant 0 : index
    %c0_4 = arith.constant 0 : index
    %3 = vector.load %arg3[%c0_3, %c0_4] : memref<1x128xf32, #tpu.memory_space<vmem>>, vector<1x128xf32>
    %4 = vector.broadcast %3 : vector<1x128xf32> to vector<64x128xf32>
    %5 = arith.addf %2, %4 : vector<64x128xf32>
    %6 = math.tanh %5 : vector<64x128xf32>
    %c0_5 = arith.constant 0 : index
    %c0_6 = arith.constant 0 : index
    %7 = vector.load %arg4[%c0_5, %c0_6] : memref<1x128xf32, #tpu.memory_space<vmem>>, vector<1x128xf32>
    %8 = vector.broadcast %7 : vector<1x128xf32> to vector<64x128xf32>
    %9 = arith.mulf %6, %8 : vector<64x128xf32>
    %cst_7 = arith.constant dense<0.000000e+00> : vector<64xf32>
    %10 = vector.multi_reduction <add>, %9, %cst_7 [1] : vector<64x128xf32> to vector<64xf32>
    %11 = vector.shape_cast %10 : vector<64xf32> to vector<64x1xf32>
    %c0_8 = arith.constant 0 : index
    %c0_9 = arith.constant 0 : index
    %12 = vector.load %arg5[%c0_8, %c0_9] : memref<64x1xf32, #tpu.memory_space<vmem>>, vector<64x1xf32>
    tpu.vector_store %arg5[%c0_8, %c0_9], %11 {strides = array<i32>} : memref<64x1xf32, #tpu.memory_space<vmem>>, vector<64x1xf32>,
    return
  }
  func.func @transform_0(%arg0: i32) -> (i32, i32) {
    %c0_i32 = arith.constant 0 : i32
    %c0_i32_0 = arith.constant 0 : i32
    return %arg0, %c0_i32 : i32, i32
  }
  func.func @transform_1(%arg0: i32) -> (i32, i32) {
    %c0_i32 = arith.constant 0 : i32
    %c0_i32_0 = arith.constant 0 : i32
    %c0_i32_1 = arith.constant 0 : i32
    return %c0_i32, %c0_i32_0 : i32, i32
  }
  func.func @transform_2(%arg0: i32) -> (i32, i32) {
    %c0_i32 = arith.constant 0 : i32
    %c0_i32_0 = arith.constant 0 : i32
    %c0_i32_1 = arith.constant 0 : i32
    return %c0_i32, %c0_i32_0 : i32, i32
  }
  func.func @transform_3(%arg0: i32) -> (i32, i32) {
    %c0_i32 = arith.constant 0 : i32
    %c0_i32_0 = arith.constant 0 : i32
    %c0_i32_1 = arith.constant 0 : i32
    return %c0_i32, %c0_i32_0 : i32, i32
  }
  func.func @transform_4(%arg0: i32) -> (i32, i32) {
    %c0_i32 = arith.constant 0 : i32
    %c0_i32_0 = arith.constant 0 : i32
    return %arg0, %c0_i32 : i32, i32
  }
}

</mosaic_0001>

<bundles_post_ra>
// kernel: tpu_custom_call.1
= control target key start
LH: loop header
LB: loop body
LE: loop exit
PB: predicated region body
PF: predicated region fallthrough
CT: control target
= control target key end

     0   :  { %vm36_vm0 = vcmask 261120   ;;  %vm205_vm1 = vcmask 7168   ;;  %s395_s1 = inlined_call_operand.vmem [shape: f32[32,128], index: 1, kind: input, shape index: {}]   ;;  %s396_s0 = inlined_call_operand.vmem [shape: f32[64,32], index: 0, kind: input, shape index: {}]   ;;  %s397_s2 = inlined_call_operand.vmem [shape: f32[1,128], index: 2, kind: input, shape index: {}]   ;;  %s398_s3 = inlined_call_operand.vmem [shape: f32[1,128], index: 3, kind: input, shape index: {}]   ;;  %s399_s4 = inlined_call_operand.vmem [shape: f32[64,1], index: 4, kind: output, shape index: {}]  }
   0x1   :  { %v25_v0 = vld [vmem:[%s395_s1] sm:$0xff]  ;;  %v26_v1 = vld [vmem:[%s395_s1 + $0x8] sm:$0xff]  ;;  %v27_v2 = vld [vmem:[%s395_s1 + $0x10] sm:$0xff] }
   0x2   :  { %v260_v3 = vpack.c.bf16 %v26_v1, %v25_v0  ;;  %v28_v4 = vld [vmem:[%s395_s1 + $0x18] sm:$0xff]  ;;  %v17_v5 = vld [vmem:[%s396_s0] sm:$0xff]  ;;  %v18_v8 = vld [vmem:[%s396_s0 + $0x8] sm:$0xff] }
   0x3   :  { %v21_v6 = vld [vmem:[%s396_s0 + $0x20] sm:$0xff]  ;;  %v264_v7 = vpack.c.bf16 %v28_v4, %v27_v2  ;;  %248 = vmatprep.mubr.msk.f32.mxu0 %vm36_vm0, %v17_v5  ;;  %v22_v9 = vld [vmem:[%s396_s0 + $0x28] sm:$0xff]  ;;  %v19_v10 = vld [vmem:[%s396_s0 + $0x10] sm:$0xff] }
   0x4   :  { %254 = vmatprep.mubr.msk.f32.mxu1 %vm36_vm0, %v21_v6  ;;  %261 = vmatprep.subr.bf16.mxu0 %v260_v3  ;;  %v23_v11 = vld [vmem:[%s396_s0 + $0x30] sm:$0xff]  ;;  %v20_v12 = vld [vmem:[%s396_s0 + $0x18] sm:$0xff]  ;;  %v218_v14 = vld [vmem:[%s397_s2] ss:$0 sm:$0xff] }
   0x5   :  { %268 = vmatprep.subr.bf16.mxu1 %v260_v3  ;;  %263 = vmatpush3.bf16.msra.mxu0 %v260_v3  ;;  %v24_v13 = vld [vmem:[%s396_s0 + $0x38] sm:$0xff]  ;;  %v227_v31 = vld [vmem:[%s398_s3] ss:$0 sm:$0xff] }
   0x6   :  { %270 = vmatpush3.bf16.msra.mxu1 %v260_v3  ;;  %265 = vmatprep.subr.bf16.mxu0 %v264_v7 }
   0x7   :  { %269 = vmatprep.subr.bf16.mxu1 %v264_v7 }
   0x9   :  { %267 = vmatpush3.bf16.msra.mxu0 %v264_v7 }
   0xa   :  { %271 = vmatpush3.bf16.msra.mxu1 %v264_v7 }
   0xc   :  { %249 = vmatmul.mubr.msk.f32.vlgmr.msra.gmra.mrb[0].mxu0 %vm36_vm0, %v18_v8 }
   0xd   :  { %255 = vmatmul.mubr.msk.f32.vlgmr.msra.gmra.mrb[0].mxu1 %vm36_vm0, %v22_v9  ;;  %251 = vmatprep.mubr.msk.f32.mxu0 %vm36_vm0, %v19_v10 }
   0xe   :  { %257 = vmatprep.mubr.msk.f32.mxu1 %vm36_vm0, %v23_v11 }
  0x10   :  { %252 = vmatmul.mubr.msk.f32.gmra.mrb[2].mxu0 %vm36_vm0, %v20_v12 }
  0x11   :  { %258 = vmatmul.mubr.msk.f32.gmra.mrb[2].mxu1 %vm36_vm0, %v24_v13 }
  0xdf   :  { %v250_v15 = vpop.f32.mrb[0].mxu0 }
  0xe0   :  { %v256_v16 = vpop.f32.mrb[0].mxu1  ;;  %v133_v17 = vadd.f32 %v250_v15, %v218_v14  ;;  %v127_v19 = vpop.f32.mrb[1].mxu0 }
  0xe1   :  { %v153_v18 = vadd.f32 %v256_v16, %v218_v14  ;;  %v147_v20 = vpop.f32.mrb[1].mxu1  ;;  %v128_v21 = vadd.f32 %v218_v14, %v127_v19 }
  0xe2   :  { %272 = vtanh.f32 %v133_v17  ;;  %v148_v24 = vadd.f32 %v218_v14, %v147_v20 }
  0xe3   :  { %274 = vtanh.f32 %v153_v18  ;;  %v253_v22 = vpop.f32.mrb[2].mxu0 }
  0xe4   :  { %v259_v23 = vpop.f32.mrb[2].mxu1  ;;  %276 = vtanh.f32 %v128_v21  ;;  %v143_v25 = vadd.f32 %v253_v22, %v218_v14  ;;  %v137_v26 = vpop.f32.mrb[3].mxu0 }
  0xe5   :  { %v157_v27 = vpop.f32.mrb[3].mxu1  ;;  %v138_v28 = vadd.f32 %v218_v14, %v137_v26  ;;  %v163_v30 = vadd.f32 %v259_v23, %v218_v14 }
  0xe6   :  { %278 = vtanh.f32 %v143_v25  ;;  %v158_v29 = vadd.f32 %v218_v14, %v157_v27 }
  0xe7   :  { %280 = vtanh.f32 %v148_v24 }
  0xe8   :  { %282 = vtanh.f32 %v138_v28 }
  0xe9   :  { %284 = vtanh.f32 %v158_v29 }
  0xea   :  { %286 = vtanh.f32 %v163_v30 }
  0xec   :  { %v273_v32 = vpop.eup %272 }
  0xed   :  { %v275_v33 = vpop.eup %274  ;;  %v182_v34 = vmul.f32 %v273_v32, %v227_v31 }
  0xee   :  { %v277_v35 = vpop.eup %276  ;;  %v186_v36 = vmul.f32 %v275_v33, %v227_v31 }
  0xef   :  { %191 = vadd.xlane.f32.xlu0 %v182_v34  ;;  %v181_v39 = vmul.f32 %v277_v35, %v227_v31 }
  0xf0   :  { %v279_v37 = vpop.eup %278  ;;  %199 = vadd.xlane.f32.xlu1 %v186_v36 }
  0xf1   :  { %v184_v38 = vmul.f32 %v279_v37, %v227_v31  ;;  %v281_v40 = vpop.eup %280 }
  0xf2   :  { %v283_v41 = vpop.eup %282  ;;  %v185_v44 = vmul.f32 %v281_v40, %v227_v31 }
  0xf3   :  { %189 = vadd.xlane.f32.xlu0 %v181_v39  ;;  %v285_v42 = vpop.eup %284  ;;  %v183_v45 = vmul.f32 %v283_v41, %v227_v31 }
  0xf4   :  { %195 = vadd.xlane.f32.xlu1 %v184_v38  ;;  %v287_v43 = vpop.eup %286  ;;  %v187_v46 = vmul.f32 %v285_v42, %v227_v31 }
  0xf5   :  { %v188_v47 = vmul.f32 %v287_v43, %v227_v31 }
  0xf7   :  { %197 = vadd.xlane.f32.xlu0 %v185_v44 }
  0xf8   :  { %193 = vadd.xlane.f32.xlu1 %v183_v45 }
  0xfb   :  { %201 = vadd.xlane.f32.xlu0 %v187_v46 }
  0xfc   :  { %203 = vadd.xlane.f32.xlu1 %v188_v47 }
 0x17c   :  { %v192_v48 = vpop.xlane.xlu0 %191 }
 0x17d   :  { %v200_v49 = vpop.xlane.xlu1 %199  ;;  %207 = vst.msk [vmem:[%s399_s4 + $0x8] sm:$0xff] %vm205_vm1, %v192_v48 }
 0x17e   :  { %211 = vst.msk [vmem:[%s399_s4 + $0x28] sm:$0xff] %vm205_vm1, %v200_v49 }
 0x180   :  { %v190_v50 = vpop.xlane.xlu0 %189 }
 0x181   :  { %v196_v51 = vpop.xlane.xlu1 %195  ;;  %206 = vst.msk [vmem:[%s399_s4] sm:$0xff] %vm205_vm1, %v190_v50 }
 0x182   :  { %209 = vst.msk [vmem:[%s399_s4 + $0x18] sm:$0xff] %vm205_vm1, %v196_v51 }
 0x184   :  { %v198_v52 = vpop.xlane.xlu0 %197 }
 0x185   :  { %v194_v53 = vpop.xlane.xlu1 %193  ;;  %210 = vst.msk [vmem:[%s399_s4 + $0x20] sm:$0xff] %vm205_vm1, %v198_v52 }
 0x186   :  { %208 = vst.msk [vmem:[%s399_s4 + $0x10] sm:$0xff] %vm205_vm1, %v194_v53 }
 0x188   :  { %v202_v54 = vpop.xlane.xlu0 %201 }
 0x189   :  { %v204_v55 = vpop.xlane.xlu1 %203  ;;  %212 = vst.msk [vmem:[%s399_s4 + $0x30] sm:$0xff] %vm205_vm1, %v202_v54 }
 0x18a   :  { %213 = vst.msk [vmem:[%s399_s4 + $0x38] sm:$0xff] %vm205_vm1, %v204_v55 }

</bundles_post_ra>
